<compile_context>
chip_gen: v6e
topology: v6e:2x2x1
jax: 0.10.0
libtpu: 0.0.40
codegen_flags: <defaults>
</compile_context>

<pallas_src>
import jax
import jax.numpy as jnp
from jax.experimental import pallas as pl
from jax.experimental.pallas import tpu as pltpu


# ---------------------------------------------------------------------------
# Kernels
# ---------------------------------------------------------------------------
def _tile_copy_kernel(x_ref, o_ref):
    # Lane-dense pass-through of the current (row_tile, cols) VMEM tile.
    o_ref[...] = x_ref[...]


def _dma_copy_kernel(x_hbm_ref, o_hbm_ref):
    # Single raw HBM->HBM DMA: skips the VMEM pipeline, the vld/vst bundle
    # slots and the (8,128) BlockSpec constraint entirely.
    def body(sem):
        cp = pltpu.make_async_copy(x_hbm_ref, o_hbm_ref, sem)
        cp.start()
        cp.wait()

    pl.run_scoped(body, pltpu.SemaphoreType.DMA(()))


# ---------------------------------------------------------------------------
# Tile sizing (closed form, no trace-time loops)
# ---------------------------------------------------------------------------
def _sublane_multiple(dtype):
    # f32 -> 8, bf16/f16 -> 16, int8/fp8 -> 32 (packed sublanes).
    itemsize = jnp.dtype(dtype).itemsize
    return max(8, 32 // max(1, itemsize))


def _pick_row_tile(rows, row_bytes, dtype, budget_bytes=3 * 1024 * 1024):
    """Largest sublane-multiple row tile under the per-operand VMEM budget,
    capped so large inputs yield >= 2 grid programs (v7x has 2 TensorCores)."""
    sub = _sublane_multiple(dtype)
    budget_rows = max(sub, (budget_bytes // max(1, row_bytes)) // sub * sub)
    half_rows = max(sub, (pl.cdiv(rows, 2) // sub) * sub)
    tile = min(budget_rows, half_rows)
    # Never larger than the sublane-rounded-up row count.
    tile = min(tile, pl.cdiv(rows, sub) * sub)
    return tile


# ---------------------------------------------------------------------------
# Standalone optimized pass-through (demo of the only op forward could do)
# ---------------------------------------------------------------------------
def auxiliary_passthrough(features_map):
    """Optimized Pallas identity pass-through of an NCHW feature map."""
    n, c, h, w = features_map.shape
    rows, cols = n * c, h * w
    dtype = features_map.dtype
    itemsize = jnp.dtype(dtype).itemsize
    sub = _sublane_multiple(dtype)
    total_bytes = 2 * features_map.size * itemsize  # read + write

    if cols % 128 == 0 and rows >= sub:
        # Lane-dense layout: last dim is a multiple of 128 -> unmasked full
        # width vector stores; tiled + pipelined over rows.
        x2d = features_map.reshape(rows, cols)  # metadata-only for contiguous NCHW
        row_tile = _pick_row_tile(rows, cols * itemsize, dtype)
        grid = (pl.cdiv(rows, row_tile),)  # ragged last block is masked
        out2d = pl.pallas_call(
            _tile_copy_kernel,
            out_shape=jax.ShapeDtypeStruct((rows, cols), dtype),
            grid=grid,
            in_specs=[pl.BlockSpec((row_tile, cols), lambda i: (i, 0))],
            out_specs=pl.BlockSpec((row_tile, cols), lambda i: (i, 0)),
            compiler_params=pltpu.CompilerParams(
                dimension_semantics=("parallel",),
            ),
            cost_estimate=pl.CostEstimate(
                flops=0, transcendentals=0, bytes_accessed=total_bytes),
        )(x2d)
        return out2d.reshape(n, c, h, w)

    # Non lane-dense (H*W % 128 != 0) or too few rows: one HBM->HBM DMA.
    return pl.pallas_call(
        _dma_copy_kernel,
        out_shape=jax.ShapeDtypeStruct(features_map.shape, dtype),
        in_specs=[pl.BlockSpec(memory_space=pl.ANY)],
        out_specs=pl.BlockSpec(memory_space=pl.ANY),
        cost_estimate=pl.CostEstimate(
            flops=0, transcendentals=0, bytes_accessed=total_bytes),
    )(features_map)


# ---------------------------------------------------------------------------
# Module port
# ---------------------------------------------------------------------------
class AuxiliaryModelClassifier:
    """JAX/Pallas port of the parameter-free, no-op PyTorch module."""

    def __init__(self, pid_num):
        # PyTorch __init__ registers no parameters; nothing to initialize.
        self.pid_num = pid_num

    def forward(self, features_map):
        # The reference forward body is empty (`return`): the correct and
        # fastest port launches no kernel, performs no sync, returns None.
        # TODO(synk): no computation exists in the reference forward to port.
        del features_map
        return None

    __call__ = forward


if __name__ == "__main__":
    key0, key1 = jax.random.split(jax.random.PRNGKey(0))
    # Small NCHW feature map consistent with a CNN backbone output.
    x = jax.random.normal(key0, (2, 4, 16, 16), dtype=jnp.float32)

    # Module forward: must return None and launch no dead-work kernel.
    model = AuxiliaryModelClassifier(pid_num=10)
    assert model(x) is None

    # Exercise the tiled, lane-dense Pallas pass-through (H*W = 256 % 128 == 0).
    out = auxiliary_passthrough(x)
    jax.block_until_ready(out)
    assert out.shape == x.shape and out.dtype == x.dtype
    assert bool(jnp.allclose(out, x))

    # Exercise the HBM->HBM DMA fallback on a non lane-dense shape.
    y = jax.random.normal(key1, (2, 3, 7, 5), dtype=jnp.float32)
    out_y = auxiliary_passthrough(y)
    jax.block_until_ready(out_y)
    assert out_y.shape == y.shape and out_y.dtype == y.dtype
    assert bool(jnp.allclose(out_y, y))

    print("KERNEL_OK")
</pallas_src>

<mosaic_0001>
module attributes {stable_mosaic.version = 11 : i64} {
  func.func @_tile_copy_kernel(%arg0: i32, %arg1: memref<8x256xf32, #tpu.memory_space<vmem>>, %arg2: memref<8x256xf32, #tpu.memory_space<vmem>>) attributes {dimension_semantics = [#tpu.dimension_semantics<parallel>], iteration_bounds = array<i64: 1>, scalar_prefetch = 0 : i64, scratch_operands = 0 : i64, tpu.core_type = #tpu.core_type<tc>, window_params = [{transform_indices = @transform_0, window_bounds = array<i64: 8, 256>}, {transform_indices = @transform_1, window_bounds = array<i64: 8, 256>}]} {
    %c0 = arith.constant 0 : index
    %c0_0 = arith.constant 0 : index
    %0 = vector.load %arg1[%c0, %c0_0] : memref<8x256xf32, #tpu.memory_space<vmem>>, vector<8x256xf32>
    %c0_1 = arith.constant 0 : index
    %c0_2 = arith.constant 0 : index
    %1 = vector.load %arg2[%c0_1, %c0_2] : memref<8x256xf32, #tpu.memory_space<vmem>>, vector<8x256xf32>
    tpu.vector_store %arg2[%c0_1, %c0_2], %0 {strides = array<i32>} : memref<8x256xf32, #tpu.memory_space<vmem>>, vector<8x256xf32>,
    return
  }
  func.func @transform_0(%arg0: i32) -> (i32, i32) {
    %c0_i32 = arith.constant 0 : i32
    %c0_i32_0 = arith.constant 0 : i32
    return %arg0, %c0_i32 : i32, i32
  }
  func.func @transform_1(%arg0: i32) -> (i32, i32) {
    %c0_i32 = arith.constant 0 : i32
    %c0_i32_0 = arith.constant 0 : i32
    return %arg0, %c0_i32 : i32, i32
  }
}

</mosaic_0001>

<bundles_post_ra>
// kernel: tpu_custom_call.1
= control target key start
LH: loop header
LB: loop body
LE: loop exit
PB: predicated region body
PF: predicated region fallthrough
CT: control target
= control target key end

     0   :  { %6 = vsyncpa [#allocation3], 0  ;;  %s104_s0 = inlined_call_operand.hbm [shape: f32[8,256], index: 0, kind: input, shape index: {}]   ;;  %s105_s1 = inlined_call_operand.hbm [shape: f32[8,256], index: 1, kind: output, shape index: {}]  }
   0x1   :  { %7 = vsyncpa [#allocation4], 0  ;;  %s86_s6 = smov [#allocation2]  }
   0x2   :  { %s14_s7 = sshll.u32 %s86_s6, 4  ;;  %s15_s7 = int_to_ptr.vmem [resolvable:$true] %s14_s7 }
   0x3   :  { %s50_s8 = scalar_lea.vmem %s15_s7, 256  ;;  %p55_p1 = scmp.lt.s32.totalorder %s15_s7, %s15_s7 }
   0x4   :  { %p51_p0 = scmp.ne.s32.totalorder %s15_s7, %s50_s8  ;;  %p56_p2 = scmp.lt.s32.totalorder %s50_s8, %s50_s8 }
   0x6   :  { %p57_p3 = por %p56_p2, %p55_p1 }
   0x8   :  { %p58_p4 = pnand %p57_p3, %p51_p0 }
   0xa   :  { %61 = shalt.err (!%p58_p4)
}
   0xb   :  { %17 = dma.hbm_to_vmem [thread:$0]  %s104_s0, 256, %s15_s7, [#allocation3]  }
   0xc   :  { %82 = dma.done.wait [#allocation3], 256  }
   0xd   :  { %83 = vsyncadd [#allocation3], 4294967040  ;;  %s87_s11 = smov [#allocation5]   ;;  %v21_v0 = vld [vmem:[#allocation2] sm:$0xff]  ;;  %v22_v1 = vld [vmem:[#allocation2 + $0x8] sm:$0xff] }
   0xe   :  { %s31_s12 = sshll.u32 %s87_s11, 4  ;;  %23 = vst [vmem:[#allocation5] sm:$0xff] %v21_v0  ;;  %24 = vst [vmem:[#allocation5 + $0x8] sm:$0xff] %v22_v1  ;;  %s32_s12 = int_to_ptr.vmem [resolvable:$true] %s31_s12 }
   0xf   :  { %s62_s13 = scalar_lea.vmem %s32_s12, 256  ;;  %p67_p6 = scmp.lt.s32.totalorder %s32_s12, %s32_s12 }
  0x10   :  { %p63_p5 = scmp.ne.s32.totalorder %s32_s12, %s62_s13  ;;  %p68_p7 = scmp.lt.s32.totalorder %s62_s13, %s62_s13 }
  0x12   :  { %p69_p8 = por %p68_p7, %p67_p6 }
  0x14   :  { %p70_p9 = pnand %p69_p8, %p63_p5 }
  0x16   :  { %73 = shalt.err (!%p70_p9)
}
  0x17   :  { %34 = dma.vmem_to_hbm [thread:$0]  %s32_s12, 256, %s105_s1, [#allocation4]  }
  0x18   :  { %84 = dma.done.wait [#allocation4], 256  }
  0x19   :  { %85 = vsyncadd [#allocation4], 4294967040 }
  0x1a   :  { %38 = vsyncpa [#allocation3], 1 }
  0x1b   :  { %39 = vsyncpa [#allocation4], 1 }

</bundles_post_ra>
